<compile_context>
chip_gen: v7x
topology: tpu7x:2x2x1
jax: 0.10.0
libtpu: 0.0.40
codegen_flags: <defaults>
</compile_context>

<pallas_src>
import functools

import jax
import jax.numpy as jnp
from jax.experimental import pallas as pl
from jax.experimental.pallas import tpu as pltpu

# ----------------------------- problem sizes ------------------------------
B = 2          # batch
S = 8          # seq_len
E = 32         # emb_dim
H = 4          # n_heads
D = 8          # kq_dim
HD = H * D     # n_heads * kq_dim
LANES = 128    # lane-dense slab width
LN_EPS = 1e-5  # torch.nn.LayerNorm default eps


# ------------------------------ Pallas kernel ------------------------------
def _mha_kernel(x_ref, wqkv_ref, wup_ref, bup_ref, lnm_ref, p_ref, bias_ref,
                out_ref, *, n_heads, kq_dim):
    """Single grid-less invocation over all B*S rows (lane-padded to 128)."""
    HDk = n_heads * kq_dim
    BS = x_ref.shape[0]

    x = x_ref[...]                                                       # (BS, 128)

    # Fused QKV projection: one MXU matmul filling 3*H*D output lanes.
    # (wqkv rows beyond E are zero, so the lane padding of x is inert.)
    qkv = jnp.dot(x, wqkv_ref[...], preferred_element_type=jnp.float32)  # (BS, 3*HD)
    q = qkv[:, :HDk]
    k = qkv[:, HDk:2 * HDk]
    v = qkv[:, 2 * HDk:]

    # Precomputed block-diagonal per-head averaging matrix (HD, HD).
    P = p_ref[...]

    def grouped_layernorm(t, gamma, beta):
        # Per-head LayerNorm over contiguous groups of kq_dim lanes; one MXU
        # pooling matmul each for mean and variance, no reshapes/transposes.
        mean = jnp.dot(t, P, preferred_element_type=jnp.float32)          # (BS, HD)
        c = t - mean
        var = jnp.dot(c * c, P, preferred_element_type=jnp.float32)       # (BS, HD)
        return c * jax.lax.rsqrt(var + LN_EPS) * gamma + beta

    # q gamma/beta rows already carry the 1/sqrt(D) attention scale.
    qn = grouped_layernorm(q, lnm_ref[0], lnm_ref[1])
    kn = grouped_layernorm(k, lnm_ref[2], lnm_ref[3])

    # Precomputed block-diagonal batch mask (queries attend within their batch).
    attn_bias = bias_ref[...]                                             # (BS, BS)

    # Contract last dims of both operands: qn @ kn^T without an explicit transpose.
    dn = (((1,), (1,)), ((), ()))

    value = jnp.zeros((BS, HDk), jnp.float32)
    for h in range(n_heads):  # static unroll; every op stays at full lane width
        mask_h = lnm_ref[4 + h]                                           # (HD,)
        s = jax.lax.dot_general(qn * mask_h, kn, dn,
                                preferred_element_type=jnp.float32)       # (BS, BS)
        s = s + attn_bias
        s = s - jnp.max(s, axis=-1, keepdims=True)                        # stable softmax
        p = jnp.exp(s)
        p = p * pl.reciprocal(jnp.sum(p, axis=-1, keepdims=True), approx=True)
        # attention_drop(p=0.0) -> identity
        # Keep accumulate-into form (v7x MRB-friendly).
        value = value + jnp.dot(p, v * mask_h, preferred_element_type=jnp.float32)

    # value_up (output lanes padded to 128 -> dense stores), +bias, +residual.
    out = jnp.dot(value, wup_ref[...], preferred_element_type=jnp.float32) + bup_ref[0]
    # value_proj_drop(p=0.0) -> identity; residual add (x is lane-padded with zeros)
    out_ref[...] = (out + x).astype(out_ref.dtype)


def mha_forward(emb, params):
    wq, wk, wv, wup, bup, qg, qb, kg, kb = params
    Bsz, Seq, Emb = emb.shape
    BS = Bsz * Seq

    inv_sqrt_d = 1.0 / jnp.sqrt(jnp.float32(D))

    # --- one-time packing / constant construction (outside the kernel) ---
    # Fused QKV weight, rows zero-padded to the 128-lane input width.
    wqkv = jnp.zeros((LANES, 3 * HD), jnp.float32).at[:Emb, :].set(
        jnp.concatenate([wq, wk, wv], axis=1))                      # (128, 3*HD)
    # value_up weight / bias padded to a lane-dense 128-wide output slab.
    wup_pad = jnp.zeros((HD, LANES), jnp.float32).at[:, :Emb].set(wup)
    bup_pad = jnp.zeros((1, LANES), jnp.float32).at[:, :Emb].set(bup)

    head_of_col = jnp.arange(HD) // D                               # (HD,)
    # Per-head lane masks (H, HD).
    masks = (head_of_col[None, :] == jnp.arange(H)[:, None]).astype(jnp.float32)
    # LN params tiled across heads; q gamma AND beta pre-scaled by 1/sqrt(D)
    # (folds the attention score scale into the affine). Packed with the head
    # masks into one aligned (8, HD) block.
    lnm = jnp.concatenate([
        jnp.stack([jnp.tile(qg[0], H) * inv_sqrt_d,
                   jnp.tile(qb[0], H) * inv_sqrt_d,
                   jnp.tile(kg[0], H),
                   jnp.tile(kb[0], H)], axis=0),
        masks], axis=0)                                             # (8, HD)

    # Block-diagonal per-head averaging matrix for the grouped LayerNorm.
    P = (head_of_col[:, None] == head_of_col[None, :]).astype(jnp.float32) / D

    # Block-diagonal batch mask: queries only attend within their own batch element.
    row_b = jnp.arange(BS) // Seq
    attn_bias = jnp.where(row_b[:, None] == row_b[None, :],
                          0.0, -1e30).astype(jnp.float32)           # (BS, BS)

    # Lane-pad the input slab to 128 (also serves as the padded residual).
    x_pad = jnp.zeros((BS, LANES), emb.dtype).at[:, :Emb].set(emb.reshape(BS, Emb))

    kernel = functools.partial(_mha_kernel, n_heads=H, kq_dim=D)
    vspec = pl.BlockSpec(memory_space=pltpu.MemorySpace.VMEM)       # whole array in VMEM

    out = pl.pallas_call(
        kernel,
        out_shape=jax.ShapeDtypeStruct((BS, LANES), emb.dtype),
        in_specs=[vspec] * 7,
        out_specs=vspec,
    )(x_pad, wqkv, wup_pad, bup_pad, lnm, P, attn_bias)

    return out[:, :Emb].reshape(Bsz, Seq, Emb)


# ------------------------- pure-JAX reference check ------------------------
def mha_reference(emb, params):
    wq, wk, wv, wup, bup, qg, qb, kg, kb = params
    Bsz, Seq, Emb = emb.shape

    def ln(x, g, b):
        mu = jnp.mean(x, axis=-1, keepdims=True)
        var = jnp.mean((x - mu) ** 2, axis=-1, keepdims=True)
        return (x - mu) / jnp.sqrt(var + LN_EPS) * g + b

    q = (emb @ wq).reshape(Bsz, Seq, H, D).transpose(0, 2, 1, 3)
    k = (emb @ wk).reshape(Bsz, Seq, H, D).transpose(0, 2, 1, 3)
    v = (emb @ wv).reshape(Bsz, Seq, H, D).transpose(0, 2, 1, 3)
    q = ln(q, qg[0], qb[0])
    k = ln(k, kg[0], kb[0])
    att = jnp.einsum('bhqd,bhkd->bhqk', q, k) / jnp.sqrt(jnp.float32(D))
    att = jax.nn.softmax(att, axis=-1)
    val = jnp.einsum('bhqk,bhkd->bhqd', att, v)
    val = val.transpose(0, 2, 1, 3).reshape(Bsz, Seq, HD)
    return val @ wup + bup[0] + emb


# ---------------------------------- main -----------------------------------
if __name__ == "__main__":
    key = jax.random.PRNGKey(0)
    k_emb, k_wq, k_wk, k_wv, k_wup, k_bup, k_qg, k_qb, k_kg, k_kb = \
        jax.random.split(key, 10)

    emb = jax.random.normal(k_emb, (B, S, E), dtype=jnp.float32)

    # Deterministic synthetic parameters (shapes follow the module's __init__).
    scale = 0.1
    params = (
        scale * jax.random.normal(k_wq, (E, HD), dtype=jnp.float32),       # query weight
        scale * jax.random.normal(k_wk, (E, HD), dtype=jnp.float32),       # key weight
        scale * jax.random.normal(k_wv, (E, HD), dtype=jnp.float32),       # value_down weight
        scale * jax.random.normal(k_wup, (HD, E), dtype=jnp.float32),      # value_up weight
        scale * jax.random.normal(k_bup, (1, E), dtype=jnp.float32),       # value_up bias
        1.0 + scale * jax.random.normal(k_qg, (1, D), dtype=jnp.float32),  # q_norm gamma
        scale * jax.random.normal(k_qb, (1, D), dtype=jnp.float32),        # q_norm beta
        1.0 + scale * jax.random.normal(k_kg, (1, D), dtype=jnp.float32),  # k_norm gamma
        scale * jax.random.normal(k_kb, (1, D), dtype=jnp.float32),        # k_norm beta
    )

    out = mha_forward(emb, params)
    out = jax.block_until_ready(out)

    ref = mha_reference(emb, params)
    assert out.shape == (B, S, E) and out.dtype == jnp.float32
    err = jnp.max(jnp.abs(out - ref))
    # Tolerance accounts for the EUP approximate reciprocal in the softmax normalize.
    assert jnp.allclose(out, ref, atol=5e-3, rtol=5e-3), f"max abs err {err}"

    print("KERNEL_OK")
</pallas_src>

<mosaic_0001>
module attributes {stable_mosaic.version = 11 : i64} {
  func.func @_mha_kernel(%arg0: memref<16x128xf32, #tpu.memory_space<vmem>>, %arg1: memref<128x96xf32, #tpu.memory_space<vmem>>, %arg2: memref<32x128xf32, #tpu.memory_space<vmem>>, %arg3: memref<1x128xf32, #tpu.memory_space<vmem>>, %arg4: memref<8x32xf32, #tpu.memory_space<vmem>>, %arg5: memref<32x32xf32, #tpu.memory_space<vmem>>, %arg6: memref<16x16xf32, #tpu.memory_space<vmem>>, %arg7: memref<16x128xf32, #tpu.memory_space<vmem>>) attributes {dimension_semantics = [], scalar_prefetch = 0 : i64, scratch_operands = 0 : i64, tpu.core_type = #tpu.core_type<tc>} {
    %c0 = arith.constant 0 : index
    %c0_0 = arith.constant 0 : index
    %0 = vector.load %arg0[%c0, %c0_0] : memref<16x128xf32, #tpu.memory_space<vmem>>, vector<16x128xf32>
    %c0_1 = arith.constant 0 : index
    %c0_2 = arith.constant 0 : index
    %1 = vector.load %arg1[%c0_1, %c0_2] : memref<128x96xf32, #tpu.memory_space<vmem>>, vector<128x96xf32>
    %cst = arith.constant dense<0.000000e+00> : vector<16x96xf32>
    %2 = tpu.matmul %0, %1, %cst {dimension_numbers = #tpu.dot_dimension_numbers<[1], [0], [0], [1], [0, 0, 1, 1], [], []>} : vector<16x128xf32>, vector<128x96xf32>, vector<16x96xf32> -> vector<16x96xf32>
    %3 = vector.extract_strided_slice %2 {offsets = [0, 0], sizes = [16, 32], strides = [1, 1]} : vector<16x96xf32> to vector<16x32xf32>
    %4 = vector.extract_strided_slice %2 {offsets = [0, 32], sizes = [16, 32], strides = [1, 1]} : vector<16x96xf32> to vector<16x32xf32>
    %5 = vector.extract_strided_slice %2 {offsets = [0, 64], sizes = [16, 32], strides = [1, 1]} : vector<16x96xf32> to vector<16x32xf32>
    %c0_3 = arith.constant 0 : index
    %c0_4 = arith.constant 0 : index
    %6 = vector.load %arg5[%c0_3, %c0_4] : memref<32x32xf32, #tpu.memory_space<vmem>>, vector<32x32xf32>
    %c0_5 = arith.constant 0 : index
    %c0_6 = arith.constant 0 : index
    %7 = vector.load %arg4[%c0_5, %c0_6] : memref<8x32xf32, #tpu.memory_space<vmem>>, vector<1x32xf32>
    %8 = vector.shape_cast %7 : vector<1x32xf32> to vector<32xf32>
    %c1 = arith.constant 1 : index
    %c0_7 = arith.constant 0 : index
    %9 = vector.load %arg4[%c1, %c0_7] : memref<8x32xf32, #tpu.memory_space<vmem>>, vector<1x32xf32>
    %10 = vector.shape_cast %9 : vector<1x32xf32> to vector<32xf32>
    %cst_8 = arith.constant dense<0.000000e+00> : vector<16x32xf32>
    %11 = tpu.matmul %3, %6, %cst_8 {dimension_numbers = #tpu.dot_dimension_numbers<[1], [0], [0], [1], [0, 0, 1, 1], [], []>} : vector<16x32xf32>, vector<32x32xf32>, vector<16x32xf32> -> vector<16x32xf32>
    %12 = arith.subf %3, %11 : vector<16x32xf32>
    %13 = arith.mulf %12, %12 : vector<16x32xf32>
    %cst_9 = arith.constant dense<0.000000e+00> : vector<16x32xf32>
    %14 = tpu.matmul %13, %6, %cst_9 {dimension_numbers = #tpu.dot_dimension_numbers<[1], [0], [0], [1], [0, 0, 1, 1], [], []>} : vector<16x32xf32>, vector<32x32xf32>, vector<16x32xf32> -> vector<16x32xf32>
    %cst_10 = arith.constant 9.99999974E-6 : f32
    %15 = vector.broadcast %cst_10 : f32 to vector<16x32xf32>
    %16 = arith.addf %14, %15 : vector<16x32xf32>
    %17 = math.rsqrt %16 : vector<16x32xf32>
    %18 = arith.mulf %12, %17 : vector<16x32xf32>
    %19 = vector.shape_cast %8 : vector<32xf32> to vector<1x32xf32>
    %20 = vector.broadcast %19 : vector<1x32xf32> to vector<16x32xf32>
    %21 = arith.mulf %18, %20 : vector<16x32xf32>
    %22 = vector.shape_cast %10 : vector<32xf32> to vector<1x32xf32>
    %23 = vector.broadcast %22 : vector<1x32xf32> to vector<16x32xf32>
    %24 = arith.addf %21, %23 : vector<16x32xf32>
    %c2 = arith.constant 2 : index
    %c0_11 = arith.constant 0 : index
    %25 = vector.load %arg4[%c2, %c0_11] : memref<8x32xf32, #tpu.memory_space<vmem>>, vector<1x32xf32>
    %26 = vector.shape_cast %25 : vector<1x32xf32> to vector<32xf32>
    %c3 = arith.constant 3 : index
    %c0_12 = arith.constant 0 : index
    %27 = vector.load %arg4[%c3, %c0_12] : memref<8x32xf32, #tpu.memory_space<vmem>>, vector<1x32xf32>
    %28 = vector.shape_cast %27 : vector<1x32xf32> to vector<32xf32>
    %cst_13 = arith.constant dense<0.000000e+00> : vector<16x32xf32>
    %29 = tpu.matmul %4, %6, %cst_13 {dimension_numbers = #tpu.dot_dimension_numbers<[1], [0], [0], [1], [0, 0, 1, 1], [], []>} : vector<16x32xf32>, vector<32x32xf32>, vector<16x32xf32> -> vector<16x32xf32>
    %30 = arith.subf %4, %29 : vector<16x32xf32>
    %31 = arith.mulf %30, %30 : vector<16x32xf32>
    %cst_14 = arith.constant dense<0.000000e+00> : vector<16x32xf32>
    %32 = tpu.matmul %31, %6, %cst_14 {dimension_numbers = #tpu.dot_dimension_numbers<[1], [0], [0], [1], [0, 0, 1, 1], [], []>} : vector<16x32xf32>, vector<32x32xf32>, vector<16x32xf32> -> vector<16x32xf32>
    %cst_15 = arith.constant 9.99999974E-6 : f32
    %33 = vector.broadcast %cst_15 : f32 to vector<16x32xf32>
    %34 = arith.addf %32, %33 : vector<16x32xf32>
    %35 = math.rsqrt %34 : vector<16x32xf32>
    %36 = arith.mulf %30, %35 : vector<16x32xf32>
    %37 = vector.shape_cast %26 : vector<32xf32> to vector<1x32xf32>
    %38 = vector.broadcast %37 : vector<1x32xf32> to vector<16x32xf32>
    %39 = arith.mulf %36, %38 : vector<16x32xf32>
    %40 = vector.shape_cast %28 : vector<32xf32> to vector<1x32xf32>
    %41 = vector.broadcast %40 : vector<1x32xf32> to vector<16x32xf32>
    %42 = arith.addf %39, %41 : vector<16x32xf32>
    %c0_16 = arith.constant 0 : index
    %c0_17 = arith.constant 0 : index
    %43 = vector.load %arg6[%c0_16, %c0_17] : memref<16x16xf32, #tpu.memory_space<vmem>>, vector<16x16xf32>
    %cst_18 = arith.constant 0.000000e+00 : f32
    %44 = vector.broadcast %cst_18 : f32 to vector<16x32xf32>
    %c4 = arith.constant 4 : index
    %c0_19 = arith.constant 0 : index
    %45 = vector.load %arg4[%c4, %c0_19] : memref<8x32xf32, #tpu.memory_space<vmem>>, vector<1x32xf32>
    %46 = vector.shape_cast %45 : vector<1x32xf32> to vector<32xf32>
    %47 = vector.shape_cast %46 : vector<32xf32> to vector<1x32xf32>
    %48 = vector.broadcast %47 : vector<1x32xf32> to vector<16x32xf32>
    %49 = arith.mulf %24, %48 : vector<16x32xf32>
    %cst_20 = arith.constant dense<0.000000e+00> : vector<16x16xf32>
    %50 = tpu.matmul %49, %42, %cst_20 {dimension_numbers = #tpu.dot_dimension_numbers<[1], [1], [0], [0], [0, 0, 1, 0], [], []>} : vector<16x32xf32>, vector<16x32xf32>, vector<16x16xf32> -> vector<16x16xf32>
    %51 = arith.addf %50, %43 : vector<16x16xf32>
    %cst_21 = arith.constant dense<0xFF800000> : vector<16xf32>
    %52 = vector.multi_reduction <maximumf>, %51, %cst_21 [1] : vector<16x16xf32> to vector<16xf32>
    %53 = vector.shape_cast %52 : vector<16xf32> to vector<16x1xf32>
    %54 = vector.broadcast %53 : vector<16x1xf32> to vector<16x16xf32>
    %55 = arith.subf %51, %54 : vector<16x16xf32>
    %56 = math.exp %55 : vector<16x16xf32>
    %cst_22 = arith.constant dense<0.000000e+00> : vector<16xf32>
    %57 = vector.multi_reduction <add>, %56, %cst_22 [1] : vector<16x16xf32> to vector<16xf32>
    %58 = vector.shape_cast %57 : vector<16xf32> to vector<16x1xf32>
    %59 = tpu.reciprocal %58 {approx = true} : vector<16x1xf32> -> vector<16x1xf32>
    %60 = vector.broadcast %59 : vector<16x1xf32> to vector<16x16xf32>
    %61 = arith.mulf %56, %60 : vector<16x16xf32>
    %62 = vector.shape_cast %46 : vector<32xf32> to vector<1x32xf32>
    %63 = vector.broadcast %62 : vector<1x32xf32> to vector<16x32xf32>
    %64 = arith.mulf %5, %63 : vector<16x32xf32>
    %cst_23 = arith.constant dense<0.000000e+00> : vector<16x32xf32>
    %65 = tpu.matmul %61, %64, %cst_23 {dimension_numbers = #tpu.dot_dimension_numbers<[1], [0], [0], [1], [0, 0, 1, 1], [], []>} : vector<16x16xf32>, vector<16x32xf32>, vector<16x32xf32> -> vector<16x32xf32>
    %66 = arith.addf %44, %65 : vector<16x32xf32>
    %c5 = arith.constant 5 : index
    %c0_24 = arith.constant 0 : index
    %67 = vector.load %arg4[%c5, %c0_24] : memref<8x32xf32, #tpu.memory_space<vmem>>, vector<1x32xf32>
    %68 = vector.shape_cast %67 : vector<1x32xf32> to vector<32xf32>
    %69 = vector.shape_cast %68 : vector<32xf32> to vector<1x32xf32>
    %70 = vector.broadcast %69 : vector<1x32xf32> to vector<16x32xf32>
    %71 = arith.mulf %24, %70 : vector<16x32xf32>
    %cst_25 = arith.constant dense<0.000000e+00> : vector<16x16xf32>
    %72 = tpu.matmul %71, %42, %cst_25 {dimension_numbers = #tpu.dot_dimension_numbers<[1], [1], [0], [0], [0, 0, 1, 0], [], []>} : vector<16x32xf32>, vector<16x32xf32>, vector<16x16xf32> -> vector<16x16xf32>
    %73 = arith.addf %72, %43 : vector<16x16xf32>
    %cst_26 = arith.constant dense<0xFF800000> : vector<16xf32>
    %74 = vector.multi_reduction <maximumf>, %73, %cst_26 [1] : vector<16x16xf32> to vector<16xf32>
    %75 = vector.shape_cast %74 : vector<16xf32> to vector<16x1xf32>
    %76 = vector.broadcast %75 : vector<16x1xf32> to vector<16x16xf32>
    %77 = arith.subf %73, %76 : vector<16x16xf32>
    %78 = math.exp %77 : vector<16x16xf32>
    %cst_27 = arith.constant dense<0.000000e+00> : vector<16xf32>
    %79 = vector.multi_reduction <add>, %78, %cst_27 [1] : vector<16x16xf32> to vector<16xf32>
    %80 = vector.shape_cast %79 : vector<16xf32> to vector<16x1xf32>
    %81 = tpu.reciprocal %80 {approx = true} : vector<16x1xf32> -> vector<16x1xf32>
    %82 = vector.broadcast %81 : vector<16x1xf32> to vector<16x16xf32>
    %83 = arith.mulf %78, %82 : vector<16x16xf32>
    %84 = vector.shape_cast %68 : vector<32xf32> to vector<1x32xf32>
    %85 = vector.broadcast %84 : vector<1x32xf32> to vector<16x32xf32>
    %86 = arith.mulf %5, %85 : vector<16x32xf32>
    %cst_28 = arith.constant dense<0.000000e+00> : vector<16x32xf32>
    %87 = tpu.matmul %83, %86, %cst_28 {dimension_numbers = #tpu.dot_dimension_numbers<[1], [0], [0], [1], [0, 0, 1, 1], [], []>} : vector<16x16xf32>, vector<16x32xf32>, vector<16x32xf32> -> vector<16x32xf32>
    %88 = arith.addf %66, %87 : vector<16x32xf32>
    %c6 = arith.constant 6 : index
    %c0_29 = arith.constant 0 : index
    %89 = vector.load %arg4[%c6, %c0_29] : memref<8x32xf32, #tpu.memory_space<vmem>>, vector<1x32xf32>
    %90 = vector.shape_cast %89 : vector<1x32xf32> to vector<32xf32>
    %91 = vector.shape_cast %90 : vector<32xf32> to vector<1x32xf32>
    %92 = vector.broadcast %91 : vector<1x32xf32> to vector<16x32xf32>
    %93 = arith.mulf %24, %92 : vector<16x32xf32>
    %cst_30 = arith.constant dense<0.000000e+00> : vector<16x16xf32>
    %94 = tpu.matmul %93, %42, %cst_30 {dimension_numbers = #tpu.dot_dimension_numbers<[1], [1], [0], [0], [0, 0, 1, 0], [], []>} : vector<16x32xf32>, vector<16x32xf32>, vector<16x16xf32> -> vector<16x16xf32>
    %95 = arith.addf %94, %43 : vector<16x16xf32>
    %cst_31 = arith.constant dense<0xFF800000> : vector<16xf32>
    %96 = vector.multi_reduction <maximumf>, %95, %cst_31 [1] : vector<16x16xf32> to vector<16xf32>
    %97 = vector.shape_cast %96 : vector<16xf32> to vector<16x1xf32>
    %98 = vector.broadcast %97 : vector<16x1xf32> to vector<16x16xf32>
    %99 = arith.subf %95, %98 : vector<16x16xf32>
    %100 = math.exp %99 : vector<16x16xf32>
    %cst_32 = arith.constant dense<0.000000e+00> : vector<16xf32>
    %101 = vector.multi_reduction <add>, %100, %cst_32 [1] : vector<16x16xf32> to vector<16xf32>
    %102 = vector.shape_cast %101 : vector<16xf32> to vector<16x1xf32>
    %103 = tpu.reciprocal %102 {approx = true} : vector<16x1xf32> -> vector<16x1xf32>
    %104 = vector.broadcast %103 : vector<16x1xf32> to vector<16x16xf32>
    %105 = arith.mulf %100, %104 : vector<16x16xf32>
    %106 = vector.shape_cast %90 : vector<32xf32> to vector<1x32xf32>
    %107 = vector.broadcast %106 : vector<1x32xf32> to vector<16x32xf32>
    %108 = arith.mulf %5, %107 : vector<16x32xf32>
    %cst_33 = arith.constant dense<0.000000e+00> : vector<16x32xf32>
    %109 = tpu.matmul %105, %108, %cst_33 {dimension_numbers = #tpu.dot_dimension_numbers<[1], [0], [0], [1], [0, 0, 1, 1], [], []>} : vector<16x16xf32>, vector<16x32xf32>, vector<16x32xf32> -> vector<16x32xf32>
    %110 = arith.addf %88, %109 : vector<16x32xf32>
    %c7 = arith.constant 7 : index
    %c0_34 = arith.constant 0 : index
    %111 = vector.load %arg4[%c7, %c0_34] : memref<8x32xf32, #tpu.memory_space<vmem>>, vector<1x32xf32>
    %112 = vector.shape_cast %111 : vector<1x32xf32> to vector<32xf32>
    %113 = vector.shape_cast %112 : vector<32xf32> to vector<1x32xf32>
    %114 = vector.broadcast %113 : vector<1x32xf32> to vector<16x32xf32>
    %115 = arith.mulf %24, %114 : vector<16x32xf32>
    %cst_35 = arith.constant dense<0.000000e+00> : vector<16x16xf32>
    %116 = tpu.matmul %115, %42, %cst_35 {dimension_numbers = #tpu.dot_dimension_numbers<[1], [1], [0], [0], [0, 0, 1, 0], [], []>} : vector<16x32xf32>, vector<16x32xf32>, vector<16x16xf32> -> vector<16x16xf32>
    %117 = arith.addf %116, %43 : vector<16x16xf32>
    %cst_36 = arith.constant dense<0xFF800000> : vector<16xf32>
    %118 = vector.multi_reduction <maximumf>, %117, %cst_36 [1] : vector<16x16xf32> to vector<16xf32>
    %119 = vector.shape_cast %118 : vector<16xf32> to vector<16x1xf32>
    %120 = vector.broadcast %119 : vector<16x1xf32> to vector<16x16xf32>
    %121 = arith.subf %117, %120 : vector<16x16xf32>
    %122 = math.exp %121 : vector<16x16xf32>
    %cst_37 = arith.constant dense<0.000000e+00> : vector<16xf32>
    %123 = vector.multi_reduction <add>, %122, %cst_37 [1] : vector<16x16xf32> to vector<16xf32>
    %124 = vector.shape_cast %123 : vector<16xf32> to vector<16x1xf32>
    %125 = tpu.reciprocal %124 {approx = true} : vector<16x1xf32> -> vector<16x1xf32>
    %126 = vector.broadcast %125 : vector<16x1xf32> to vector<16x16xf32>
    %127 = arith.mulf %122, %126 : vector<16x16xf32>
    %128 = vector.shape_cast %112 : vector<32xf32> to vector<1x32xf32>
    %129 = vector.broadcast %128 : vector<1x32xf32> to vector<16x32xf32>
    %130 = arith.mulf %5, %129 : vector<16x32xf32>
    %cst_38 = arith.constant dense<0.000000e+00> : vector<16x32xf32>
    %131 = tpu.matmul %127, %130, %cst_38 {dimension_numbers = #tpu.dot_dimension_numbers<[1], [0], [0], [1], [0, 0, 1, 1], [], []>} : vector<16x16xf32>, vector<16x32xf32>, vector<16x32xf32> -> vector<16x32xf32>
    %132 = arith.addf %110, %131 : vector<16x32xf32>
    %c0_39 = arith.constant 0 : index
    %c0_40 = arith.constant 0 : index
    %133 = vector.load %arg2[%c0_39, %c0_40] : memref<32x128xf32, #tpu.memory_space<vmem>>, vector<32x128xf32>
    %cst_41 = arith.constant dense<0.000000e+00> : vector<16x128xf32>
    %134 = tpu.matmul %132, %133, %cst_41 {dimension_numbers = #tpu.dot_dimension_numbers<[1], [0], [0], [1], [0, 0, 1, 1], [], []>} : vector<16x32xf32>, vector<32x128xf32>, vector<16x128xf32> -> vector<16x128xf32>
    %c0_42 = arith.constant 0 : index
    %c0_43 = arith.constant 0 : index
    %135 = vector.load %arg3[%c0_42, %c0_43] : memref<1x128xf32, #tpu.memory_space<vmem>>, vector<1x128xf32>
    %136 = vector.shape_cast %135 : vector<1x128xf32> to vector<128xf32>
    %137 = vector.shape_cast %136 : vector<128xf32> to vector<1x128xf32>
    %138 = vector.broadcast %137 : vector<1x128xf32> to vector<16x128xf32>
    %139 = arith.addf %134, %138 : vector<16x128xf32>
    %140 = arith.addf %139, %0 : vector<16x128xf32>
    %c0_44 = arith.constant 0 : index
    %c0_45 = arith.constant 0 : index
    %141 = vector.load %arg7[%c0_44, %c0_45] : memref<16x128xf32, #tpu.memory_space<vmem>>, vector<16x128xf32>
    tpu.vector_store %arg7[%c0_44, %c0_45], %140 {strides = array<i32>} : memref<16x128xf32, #tpu.memory_space<vmem>>, vector<16x128xf32>,
    return
  }
}

</mosaic_0001>

<bundles_post_ra>
// kernel: tpu_custom_call.1
= control target key start
LH: loop header
LB: loop body
LE: loop exit
PB: predicated region body
PF: predicated region fallthrough
CT: control target
= control target key end

     0   :  { %s2293_s0 = inlined_call_operand.vmem [shape: f32[16,128], index: 0, kind: input, shape index: {}]   ;;  %s2294_s1 = inlined_call_operand.vmem [shape: f32[128,96], index: 1, kind: input, shape index: {}]   ;;  %s2295_s2 = inlined_call_operand.vmem [shape: f32[32,128], index: 2, kind: input, shape index: {}]   ;;  %s2296_s3 = inlined_call_operand.vmem [shape: f32[1,128], index: 3, kind: input, shape index: {}]   ;;  %s2297_s4 = inlined_call_operand.vmem [shape: f32[8,32], index: 4, kind: input, shape index: {}]   ;;  %s2298_s5 = inlined_call_operand.vmem [shape: f32[32,32], index: 5, kind: input, shape index: {}]   ;;  %s2299_s6 = inlined_call_operand.vmem [shape: f32[16,16], index: 6, kind: input, shape index: {}]   ;;  %s2300_s7 = inlined_call_operand.hbm [shape: f32[16,128], index: 7, kind: output, shape index: {}]  }
   0x1   :  { %v29_v0 = vld [vmem:[%s2294_s1] sm:$0xff]  ;;  %v30_v1 = vld [vmem:[%s2294_s1 + $0x8] sm:$0xff]  ;;  %v31_v2 = vld [vmem:[%s2294_s1 + $0x10] sm:$0xff] }
   0x2   :  { %v1741_v3 = vpack.c.bf16 %v30_v1, %v29_v0  ;;  %v32_v4 = vld [vmem:[%s2294_s1 + $0x18] sm:$0xff]  ;;  %v33_v6 = vld [vmem:[%s2294_s1 + $0x20] sm:$0xff]  ;;  %v34_v7 = vld [vmem:[%s2294_s1 + $0x28] sm:$0xff] }
   0x3   :  { %v1745_v5 = vpack.c.bf16 %v32_v4, %v31_v2  ;;  %v1749_v8 = vpack.c.bf16 %v34_v7, %v33_v6  ;;  %v35_v9 = vld [vmem:[%s2294_s1 + $0x30] sm:$0xff]  ;;  %v36_v10 = vld [vmem:[%s2294_s1 + $0x38] sm:$0xff]  ;;  %v2027_v11 = vld [vmem:[%s2293_s0] sm:$0xff] }
   0x4   :  { %1742 = vmatprep.subr.bf16.mxu0 %v1741_v3  ;;  %1627 = vmatprep.mubr.f32.mxu0 %v2027_v11  ;;  %v120_v12 = vld [vmem:[%s2298_s5] sm:$0xff]  ;;  %v121_v13 = vld [vmem:[%s2298_s5 + $0x8] sm:$0xff]  ;;  %v122_v14 = vld [vmem:[%s2298_s5 + $0x10] sm:$0xff] }
   0x5   :  { %1744 = vmatpush3.bf16.msra.mxu0 %v1741_v3  ;;  %v2039_v15 = vpack.c.bf16 %v121_v13, %v120_v12  ;;  %v123_v16 = vld [vmem:[%s2298_s5 + $0x18] sm:$0xff] }
   0x6   :  { %1746 = vmatprep.subr.bf16.mxu0 %v1745_v5 }
   0x7   :  { %12 = vsyncpa [#allocation3], 0  ;;  %v1777_v17 = vpack.c.bf16 %v123_v16, %v122_v14  ;;  %v1753_v18 = vpack.c.bf16 %v36_v10, %v35_v9  ;;  %1774 = vmatprep.subr.bf16.mxu1 %v2039_v15  ;;  %v37_v19 = vld [vmem:[%s2294_s1 + $0x40] sm:$0xff]  ;;  %v38_v20 = vld [vmem:[%s2294_s1 + $0x48] sm:$0xff]  ;;  %vm126_vm0 = vcmask 261120   ;;  %s1954_s21 = smov 96  }
   0x8   :  { %1776 = vmatpush3.bf16.msra.mxu1 %v2039_v15  ;;  %v1757_v21 = vpack.c.bf16 %v38_v20, %v37_v19  ;;  %v39_v22 = vld [vmem:[%s2294_s1 + $0x50] sm:$0xff]  ;;  %v40_v23 = vld [vmem:[%s2294_s1 + $0x58] sm:$0xff]  ;;  %v41_v25 = vld [vmem:[%s2294_s1 + $0x60] sm:$0xff]  ;;  %vm623_vm2 = vcmask 130048   ;;  %s1956_s13 = smov 64   ;;  %s1957_s24 = smov [#allocation2]  }
   0x9   :  { %1748 = vmatpush3.bf16.msra.mxu0 %v1745_v5  ;;  %1778 = vmatprep.subr.bf16.mxu1 %v1777_v17  ;;  %v1761_v24 = vpack.c.bf16 %v40_v23, %v39_v22  ;;  %v42_v26 = vld [vmem:[%s2294_s1 + $0x68] sm:$0xff]  ;;  %v43_v28 = vld [vmem:[%s2294_s1 + $0x70] sm:$0xff]  ;;  %v44_v29 = vld [vmem:[%s2294_s1 + $0x78] sm:$0xff] }
   0xa   :  { %1750 = vmatprep.subr.bf16.mxu0 %v1749_v8  ;;  %v1765_v27 = vpack.c.bf16 %v42_v26, %v41_v25  ;;  %v1769_v30 = vpack.c.bf16 %v44_v29, %v43_v28  ;;  %v2074_v31 = vld [vmem:[%s2293_s0 + $0x8] sm:$0xff]  ;;  %s1955_s0 = smov 32   ;;  %v1476_v49 = vld [vmem:[%s2297_s4] ss:$0 sm:$0xff]  ;;  %v1477_v52 = vld [vmem:[%s2297_s4 + $0x1] ss:$0 sm:$0xff] }
   0xb   :  { %v2113_v57 = vld [vmem:[%s2297_s4 + $0x4] ss:$0 sm:$0xff]  ;;  %v1489_v3 = vld [vmem:[%s2297_s4 + $0x5] ss:$0 sm:$0xff]  ;;  %v1483_v13 = vld [vmem:[%s2297_s4 + $0x3] ss:$0 sm:$0xff] }
   0xc   :  { %1780 = vmatpush3.bf16.msra.mxu1 %v1777_v17  ;;  %v1482_v14 = vld [vmem:[%s2297_s4 + $0x2] ss:$0 sm:$0xff]  ;;  %vm2144_vm1 = vmpackc.low %vm126_vm0, %vm126_vm0 }
   0xd   :  { %1752 = vmatpush3.bf16.msra.mxu0 %v1749_v8  ;;  %1782 = vmatprep.subr.bf16.mxu1 %v2039_v15 }
   0xe   :  { %1754 = vmatprep.subr.bf16.mxu0 %v1753_v18 }
  0x11   :  { %1756 = vmatpush3.bf16.msra.mxu0 %v1753_v18 }
  0x12   :  { %1758 = vmatprep.subr.bf16.mxu0 %v1757_v21 }
  0x15   :  { %1760 = vmatpush3.bf16.msra.mxu0 %v1757_v21 }
  0x16   :  { %1762 = vmatprep.subr.bf16.mxu0 %v1761_v24 }
  0x19   :  { %1764 = vmatpush3.bf16.msra.mxu0 %v1761_v24 }
  0x1a   :  { %1766 = vmatprep.subr.bf16.mxu0 %v1765_v27 }
  0x1d   :  { %1768 = vmatpush3.bf16.msra.mxu0 %v1765_v27 }
  0x1e   :  { %1770 = vmatprep.subr.bf16.mxu0 %v1769_v30 }
  0x21   :  { %1772 = vmatpush3.bf16.msra.mxu0 %v1769_v30 }
  0x24   :  { %1628 = vmatmul.mubr.f32.vlgmr.msra.gmra.mrb[0].mxu0 %v2074_v31 }
  0xf7   :  { %v2077_v32 = vpop.f32.mrb[0].mxu0 }
  0xf8   :  { %v2079_v33 = vpop.f32.mrb[1].mxu0 }
  0xf9   :  { %311 = vrot.lane.b32.xlu0 %v2079_v33, %s1954_s21  ;;  %1638 = vmatprep.mubr.msk.f32.mxu1 %vm126_vm0, %v2079_v33 }
  0xfa   :  { %1639 = vmatmul.mubr.msk.f32.vlgmr.msra.gmra.mrb[0].mxu1 %vm126_vm0, %v2077_v32 }
  0xfb   :  { %1784 = vmatpush3.bf16.msra.mxu1 %v2039_v15 }
  0xfc   :  { %1786 = vmatprep.subr.bf16.mxu1 %v1777_v17 }
  0xfd   :  { %313 = vrot.lane.b32.xlu0 %v2077_v32, %s1954_s21 }
  0xff   :  { %1788 = vmatpush3.bf16.msra.mxu1 %v1777_v17 }
 0x100   :  { %1790 = vmatprep.subr.bf16.mxu1 %v2039_v15 }
 0x16b   :  { %v312_v40 = vpop.permute.xlu0 %311 }
 0x16f   :  { %v314_v41 = vpop.permute.xlu0 %313 }
 0x1cd   :  { %v1640_v34 = vpop.f32.mrb[0].mxu1 }
 0x1ce   :  { %v209_v35 = vsub.f32 %v2077_v32, %v1640_v34  ;;  %v199_v36 = vpop.f32.mrb[1].mxu1 }
 0x1cf   :  { %v208_v37 = vsub.f32 %v2079_v33, %v199_v36  ;;  %v2170_v36 = vld [vmem:[%s2299_s6 + $0x8] sm:$0xff] }
 0x1d0   :  { %v211_v39 = vmul.f32 %v209_v35, %v209_v35 }
 0x1d1   :  { %v210_v38 = vmul.f32 %v208_v37, %v208_v37 }
 0x1d3   :  { %1649 = vmatprep.mubr.msk.f32.mxu1 %vm126_vm0, %v210_v38 }
 0x1d4   :  { %1650 = vmatmul.mubr.msk.f32.vlgmr.msra.gmra.mrb[2].mxu1 %vm126_vm0, %v211_v39 }
 0x1d5   :  { %1792 = vmatpush3.bf16.msra.mxu1 %v2039_v15  ;;  %1660 = vmatprep.mubr.msk.f32.mxu1 %vm126_vm0, %v312_v40 }
 0x1d6   :  { %1794 = vmatprep.subr.bf16.mxu1 %v1777_v17 }
 0x1d9   :  { %1796 = vmatpush3.bf16.msra.mxu1 %v1777_v17 }
 0x1da   :  { %1798 = vmatprep.subr.bf16.mxu1 %v2039_v15 }
 0x1dc   :  { %1661 = vmatmul.mubr.msk.f32.vlgmr.msra.gmra.mrb[4].mxu1 %vm126_vm0, %v314_v41 }
 0x1dd   :  { %1800 = vmatpush3.bf16.msra.mxu1 %v2039_v15 }
 0x1de   :  { %1802 = vmatprep.subr.bf16.mxu1 %v1777_v17 }
 0x1e1   :  { %1804 = vmatpush3.bf16.msra.mxu1 %v1777_v17 }
 0x2a7   :  { %v1651_v42 = vpop.f32.mrb[2].mxu1 }
 0x2a8   :  { %v290_v43 = vadd.f32 1e-05, %v1651_v42  ;;  %v284_v44 = vpop.f32.mrb[3].mxu1 }
 0x2a9   :  { %v285_v45 = vadd.f32 1e-05, %v284_v44 }
 0x2aa   :  { %1890 = vrsqrt.f32 %v290_v43 }
 0x2ab   :  { %1892 = vrsqrt.f32 %v285_v45 }
 0x2af   :  { %v1662_v46 = vpop.f32.mrb[4].mxu1 }
 0x2b0   :  { %v385_v47 = vpop.f32.mrb[5].mxu1 }
 0x2b1   :  { %396 = vrot.lane.b32.xlu1 %v385_v47, %s1955_s0 }
 0x2b4   :  { %v1891_v48 = vpop.eup %1890 }
 0x2b5   :  { %v1893_v50 = vpop.eup %1892  ;;  %v296_v51 = vmul.f32 %v1891_v48, %v209_v35  ;;  %398 = vrot.lane.b32.xlu1 %v1662_v46, %s1955_s0 }
 0x2b6   :  { %v295_v53 = vmul.f32 %v1893_v50, %v208_v37  ;;  %v2175_v37 = vld [vmem:[%s2299_s6] sm:$0xff] }
 0x2b7   :  { %v302_v54 = vmul.f32 %v1476_v49, %v296_v51 }
 0x2b8   :  { %v301_v55 = vmul.f32 %v1476_v49, %v295_v53 }
 0x2b9   :  { %v2108_v56 = vadd.f32 %v1477_v52, %v302_v54 }
 0x2ba   :  { %v2115_v58 = vadd.f32 %v1477_v52, %v301_v55 }
 0x2bb   :  { %v531_v34 = vmul.f32 %v2113_v57, %v2108_v56  ;;  %v658_v35 = vmul.f32 %v1489_v3, %v2108_v56 }
 0x2bc   :  { %v530_v59 = vmul.f32 %v2113_v57, %v2115_v58  ;;  %v657_v5 = vmul.f32 %v1489_v3, %v2115_v58 }
 0x2be   :  { %1678 = vmatprep.mubr.msk.f32.mxu0 %vm126_vm0, %v530_v59 }
 0x323   :  { %v397_v60 = vpop.permute.xlu1 %396 }
 0x324   :  { %v402_v61 = vsub.f32 %v2079_v33, %v397_v60 }
 0x326   :  { %v404_v62 = vmul.f32 %v402_v61, %v402_v61 }
 0x327   :  { %v399_v63 = vpop.permute.xlu1 %398 }
 0x328   :  { %v403_v0 = vsub.f32 %v2077_v32, %v399_v63  ;;  %408 = vrot.lane.b32.xlu0 %v404_v62, %s1954_s21 }
 0x32a   :  { %v405_v1 = vmul.f32 %v403_v0, %v403_v0 }
 0x32c   :  { %410 = vrot.lane.b32.xlu1 %v405_v1, %s1954_s21 }
 0x39a   :  { %v409_v2 = vpop.permute.xlu0 %408 }
 0x39b   :  { %1671 = vmatprep.mubr.msk.f32.mxu1 %vm126_vm0, %v409_v2 }
 0x39e   :  { %v411_v4 = vpop.permute.xlu1 %410 }
 0x39f   :  { %1672 = vmatmul.mubr.msk.f32.vlgmr.msra.gmra.mrb[6].mxu1 %vm126_vm0, %v411_v4 }
 0x3a0   :  { %1685 = vmatprep.mubr.msk.f32.mxu1 %vm126_vm0, %v657_v5 }
 0x472   :  { %v1673_v6 = vpop.f32.mrb[6].mxu1 }
 0x473   :  { %v488_v7 = vadd.f32 1e-05, %v1673_v6  ;;  %v482_v8 = vpop.f32.mrb[7].mxu1 }
 0x474   :  { %v483_v9 = vadd.f32 1e-05, %v482_v8 }
 0x475   :  { %1894 = vrsqrt.f32 %v488_v7 }
 0x476   :  { %1896 = vrsqrt.f32 %v483_v9 }
 0x47f   :  { %v1895_v10 = vpop.eup %1894 }
 0x480   :  { %v1897_v12 = vpop.eup %1896  ;;  %497 = vrot.lane.b32.xlu1 %v1895_v10, %s1955_s0 }
 0x481   :  { %495 = vrot.lane.b32.xlu0 %v1897_v12, %s1955_s0  ;;  %v1498_v12 = vld [vmem:[%s2297_s4 + $0x6] ss:$0 sm:$0xff] }
 0x484   :  { %518 = vrot.lane.b32.xlu1 %v1483_v13, %s1955_s0 }
 0x485   :  { %508 = vrot.lane.b32.xlu0 %v1482_v14, %s1955_s0 }
 0x4f2   :  { %v498_v15 = vpop.permute.xlu1 %497 }
 0x4f3   :  { %v496_v16 = vpop.permute.xlu0 %495  ;;  %v502_v17 = vmul.f32 %v498_v15, %v403_v0  ;;  %v951_v15 = vmul.f32 %v1498_v12, %v2115_v58 }
 0x4f4   :  { %v501_v18 = vmul.f32 %v496_v16, %v402_v61  ;;  %v1505_v16 = vld [vmem:[%s2297_s4 + $0x7] ss:$0 sm:$0xff] }
 0x4f6   :  { %v519_v20 = vpop.permute.xlu1 %518 }
 0x4f7   :  { %v509_v19 = vpop.permute.xlu0 %508 }
 0x4f8   :  { %v511_v21 = vmul.f32 %v509_v19, %v501_v18  ;;  %v512_v22 = vmul.f32 %v509_v19, %v502_v17  ;;  %v952_v17 = vmul.f32 %v1498_v12, %v2108_v56  ;;  %v1158_v18 = vmul.f32 %v1505_v16, %v2115_v58 }
 0x4f9   :  { %v1159_v19 = vmul.f32 %v1505_v16, %v2108_v56 }
 0x4fa   :  { %v521_v23 = vadd.f32 %v519_v20, %v511_v21  ;;  %v522_v24 = vadd.f32 %v519_v20, %v512_v22 }
 0x4fc   :  { %v1865_v25 = vpack.i.bf16 %v522_v24, %v521_v23 }
 0x4fe   :  { %1866 = vrot.lane.b32.xlu0 %v1865_v25, %s1954_s21 }
 0x570   :  { %v1867_v26 = vpop.permute.xlu0 %1866 }
 0x571   :  { %v1869_v27 = vunpack.i.h.bf16 %v1867_v26  ;;  %v1868_v28 = vunpack.i.l.bf16 %v1867_v26 }
 0x573   :  { %v2148_v30 = vpack.c.bf16 %v1869_v27, %v1868_v28 }
 0x575   :  { %1807 = vmatprep.subr.msk.bf16.mxu0 %vm2144_vm1, %v2148_v30  ;;  %1813 = vmatprep.subr.msk.bf16.mxu1 %vm2144_vm1, %v2148_v30 }
 0x576   :  { %1810 = vmatpush3.bf16.xpose.msk.msra.mxu0 %vm2144_vm1, %v2148_v30  ;;  %1816 = vmatpush3.bf16.xpose.msk.msra.mxu1 %vm2144_vm1, %v2148_v30 }
 0x57d   :  { %1679 = vmatmul.mubr.msk.f32.vlgmr.msra.gmra.mrb[2].mxu0 %vm126_vm0, %v531_v34  ;;  %1686 = vmatmul.mubr.msk.f32.vlgmr.msra.gmra.mrb[8].mxu1 %vm126_vm0, %v658_v35 }
 0x650   :  { %v1680_v38 = vpop.f32.mrb[2].mxu0  ;;  %v1687_v39 = vpop.f32.mrb[8].mxu1 }
 0x651   :  { %v737_v40 = vadd.f32 %v1687_v39, %v2170_v36  ;;  %v614_v41 = vpop.f32.mrb[3].mxu0  ;;  %v731_v42 = vpop.f32.mrb[9].mxu1  ;;  %v620_v1 = vadd.f32 %v1680_v38, %v2170_v36 }
 0x652   :  { %v732_v43 = vadd.f32 %v731_v42, %v2175_v37  ;;  %v2183_v46 = vadd.f32 %v614_v41, %v2175_v37 }
 0x653   :  { %v743_v44 = vsel %vm623_vm2, %v737_v40, -inf  ;;  %v627_v2 = vsel %vm623_vm2, %v620_v1, -inf }
 0x654   :  { %744 = vmax.xlane.f32.xlu0 %v743_v44  ;;  %v740_v45 = vsel %vm623_vm2, %v732_v43, -inf  ;;  %v624_v47 = vsel %vm623_vm2, %v2183_v46, -inf }
 0x655   :  { %741 = vmax.xlane.f32.xlu1 %v740_v45 }
 0x66a   :  { %763 = vrot.lane.b32.xlu0 %v1489_v3, %s1956_s13 }
 0x689   :  { %625 = vmax.xlane.f32.xlu0 %v624_v47 }
 0x6e1   :  { %v745_v48 = vpop.xlane.xlu0 %744 }
 0x6e2   :  { %v747_v49 = vsub.f32 %v737_v40, %v745_v48  ;;  %v742_v50 = vpop.xlane.xlu1 %741 }
 0x6e3   :  { %v746_v51 = vsub.f32 %v732_v43, %v742_v50 }
 0x6e4   :  { %v750_v52 = vmul.f32 1.442695, %v747_v49 }
 0x6e5   :  { %v748_v53 = vmul.f32 1.442695, %v746_v51  ;;  %v764_v54 = vpop.permute.xlu0 %763 }
 0x6e6   :  { %1898 = vpow2.f32 %v750_v52  ;;  %v766_v55 = vmul.f32 %v764_v54, %v2079_v33  ;;  %v767_v59 = vmul.f32 %v2077_v32, %v764_v54 }
 0x6e7   :  { %1900 = vpow2.f32 %v748_v53 }
 0x6e8   :  { %v1870_v60 = vpack.i.bf16 %v767_v59, %v766_v55 }
 0x6f0   :  { %v1899_v61 = vpop.eup %1898 }
 0x6f1   :  { %v755_v62 = vsel %vm623_vm2, %v1899_v61, 0.0  ;;  %v1901_v63 = vpop.eup %1900 }
 0x6f2   :  { %756 = vadd.xlane.f32.xlu1 %v755_v62  ;;  %v752_v0 = vsel %vm623_vm2, %v1901_v63, 0.0 }
 0x6f6   :  { %753 = vadd.xlane.f32.xlu1 %v752_v0 }
 0x707   :  { %1871 = vrot.lane.b32.xlu1 %v1870_v60, %s1956_s13 }
 0x716   :  { %v626_v35 = vpop.xlane.xlu0 %625 }
 0x72b   :  { %628 = vmax.xlane.f32.xlu1 %v627_v2 }
 0x77f   :  { %v757_v3 = vpop.xlane.xlu1 %756 }
 0x780   :  { %1902 = vrcp.f32 %v757_v3 }
 0x783   :  { %v754_v4 = vpop.xlane.xlu1 %753 }
 0x784   :  { %1904 = vrcp.f32 %v754_v4 }
 0x787   :  { %v1872_v5 = vpop.permute.xlu1 %1871 }
 0x788   :  { %v1874_v6 = vunpack.i.h.bf16 %v1872_v5  ;;  %v1873_v7 = vunpack.i.l.bf16 %v1872_v5 }
 0x78a   :  { %v1817_v8 = vpack.c.bf16 %v1874_v6, %v1873_v7  ;;  %v1903_v9 = vpop.eup %1902 }
 0x78b   :  { %v761_v14 = vmul.f32 %v1903_v9, %v1899_v61 }
 0x78c   :  { %1818 = vmatprep.subr.bf16.mxu1 %v1817_v8 }
 0x78d   :  { %1820 = vmatpush3.bf16.msra.mxu1 %v1817_v8 }
 0x78e   :  { %v1905_v10 = vpop.eup %1904  ;;  %1827 = vmatprep.subr.msk.bf16.mxu1 %vm2144_vm1, %v2148_v30 }
 0x78f   :  { %v760_v13 = vmul.f32 %v1905_v10, %v1901_v63 }
 0x791   :  { %1692 = vmatprep.mubr.msk.f32.mxu1 %vm623_vm2, %v760_v13 }
 0x792   :  { %1693 = vmatmul.mubr.msk.f32.vlgmr.msra.gmra.mrb[10].mxu1 %vm623_vm2, %v761_v14 }
 0x793   :  { %1706 = vmatprep.mubr.msk.f32.mxu1 %vm126_vm0, %v951_v15 }
 0x796   :  { %1830 = vmatpush3.bf16.xpose.msk.msra.mxu1 %vm2144_vm1, %v2148_v30 }
 0x797   :  { %1837 = vmatprep.subr.msk.bf16.mxu1 %vm2144_vm1, %v2148_v30 }
 0x79d   :  { %1707 = vmatmul.mubr.msk.f32.vlgmr.msra.gmra.mrb[12].mxu1 %vm126_vm0, %v952_v17 }
 0x79e   :  { %1840 = vmatpush3.bf16.xpose.msk.msra.mxu1 %vm2144_vm1, %v2148_v30  ;;  %1720 = vmatprep.mubr.msk.f32.mxu1 %vm126_vm0, %v1158_v18 }
 0x7a5   :  { %1721 = vmatmul.mubr.msk.f32.vlgmr.msra.gmra.mrb[14].mxu1 %vm126_vm0, %v1159_v19 }
 0x7b8   :  { %v629_v38 = vpop.xlane.xlu1 %628 }
 0x7b9   :  { %v631_v39 = vsub.f32 %v620_v1, %v629_v38 }
 0x865   :  { %v2222_v20 = vpop.f32.mrb[10].mxu1 }
 0x866   :  { %v2224_v21 = vpop.f32.mrb[11].mxu1 }
 0x870   :  { %v1708_v22 = vpop.f32.mrb[12].mxu1 }
 0x871   :  { %v1025_v23 = vpop.f32.mrb[13].mxu1  ;;  %v1031_v24 = vadd.f32 %v1708_v22, %v2170_v36 }
 0x872   :  { %v1026_v58 = vadd.f32 %v1025_v23, %v2175_v37 }
 0x873   :  { %v1037_v27 = vsel %vm623_vm2, %v1031_v24, -inf }
 0x874   :  { %v1034_v25 = vsel %vm623_vm2, %v1026_v58, -inf }
 0x875   :  { %1035 = vmax.xlane.f32.xlu0 %v1034_v25 }
 0x878   :  { %v1722_v26 = vpop.f32.mrb[14].mxu1 }
 0x879   :  { %v1238_v56 = vadd.f32 %v1722_v26, %v2170_v36  ;;  %v1232_v28 = vpop.f32.mrb[15].mxu1  ;;  %1038 = vmax.xlane.f32.xlu0 %v1037_v27  ;;  %v630_v36 = vsub.f32 %v2183_v46, %v626_v35 }
 0x87a   :  { %v1233_v29 = vadd.f32 %v1232_v28, %v2175_v37  ;;  %v634_v37 = vmul.f32 1.442695, %v631_v39 }
 0x87b   :  { %v1244_v30 = vsel %vm623_vm2, %v1238_v56, -inf  ;;  %v632_v40 = vmul.f32 1.442695, %v630_v36 }
 0x87c   :  { %1245 = vmax.xlane.f32.xlu1 %v1244_v30  ;;  %v1241_v34 = vsel %vm623_vm2, %v1233_v29, -inf }
 0x87d   :  { %1242 = vmax.xlane.f32.xlu0 %v1241_v34  ;;  %1906 = vpow2.f32 %v632_v40 }
 0x87e   :  { %1908 = vpow2.f32 %v634_v37  ;;  %v1360_v37 = vld [vmem:[%s2295_s2] sm:$0xff] }
 0x887   :  { %v1907_v41 = vpop.eup %1906 }
 0x888   :  { %v1909_v42 = vpop.eup %1908  ;;  %v636_v43 = vsel %vm623_vm2, %v1907_v41, 0.0 }
 0x889   :  { %v639_v44 = vsel %vm623_vm2, %v1909_v42, 0.0 }
 0x88d   :  { %1057 = vrot.lane.b32.xlu1 %v1498_v12, %s1956_s13 }
 0x891   :  { %1264 = vrot.lane.b32.xlu1 %v1505_v16, %s1956_s13 }
 0x893   :  { %647 = vrot.lane.b32.xlu0 %v2113_v57, %s1956_s13 }
 0x8b2   :  { %637 = vadd.xlane.f32.xlu0 %v636_v43 }
 0x8b5   :  { %640 = vadd.xlane.f32.xlu1 %v639_v44 }
 0x902   :  { %v1036_v45 = vpop.xlane.xlu0 %1035 }
 0x903   :  { %v1040_v47 = vsub.f32 %v1026_v58, %v1036_v45 }
 0x905   :  { %v1042_v49 = vmul.f32 1.442695, %v1040_v47 }
 0x906   :  { %v1039_v57 = vpop.xlane.xlu0 %1038 }
 0x907   :  { %v1041_v48 = vsub.f32 %v1031_v24, %v1039_v57 }
 0x909   :  { %v1044_v46 = vmul.f32 1.442695, %v1041_v48  ;;  %v1246_v50 = vpop.xlane.xlu1 %1245 }
 0x90a   :  { %v1248_v51 = vsub.f32 %v1238_v56, %v1246_v50  ;;  %v1243_v52 = vpop.xlane.xlu0 %1242  ;;  %v1363_v50 = vld [vmem:[%s2295_s2 + $0x18] sm:$0xff] }
 0x90b   :  { %1910 = vpow2.f32 %v1044_v46  ;;  %v1247_v12 = vsub.f32 %v1233_v29, %v1243_v52  ;;  %v1362_v46 = vld [vmem:[%s2295_s2 + $0x10] sm:$0xff] }
 0x90c   :  { %1912 = vpow2.f32 %v1042_v49  ;;  %v1251_v53 = vmul.f32 1.442695, %v1248_v51  ;;  %v1849_v51 = vpack.c.bf16 %v1363_v50, %v1362_v46 }
 0x90d   :  { %v1058_v54 = vpop.permute.xlu1 %1057  ;;  %v1249_v13 = vmul.f32 1.442695, %v1247_v12 }
 0x90e   :  { %v1060_v55 = vmul.f32 %v1058_v54, %v2079_v33  ;;  %v1061_v59 = vmul.f32 %v2077_v32, %v1058_v54  ;;  %v648_v60 = vpop.permute.xlu0 %647  ;;  %1914 = vpow2.f32 %v1251_v53 }
 0x90f   :  { %v650_v61 = vmul.f32 %v648_v60, %v2079_v33  ;;  %v651_v62 = vmul.f32 %v2077_v32, %v648_v60  ;;  %1916 = vpow2.f32 %v1249_v13 }
 0x910   :  { %v1880_v63 = vpack.i.bf16 %v1061_v59, %v1060_v55  ;;  %v1512_v59 = vld [vmem:[%s2296_s3] ss:$0 sm:$0xff] }
 0x911   :  { %v1875_v0 = vpack.i.bf16 %v651_v62, %v650_v61  ;;  %v1265_v1 = vpop.permute.xlu1 %1264 }
 0x912   :  { %v1267_v2 = vmul.f32 %v1265_v1, %v2079_v33  ;;  %v1268_v3 = vmul.f32 %v2077_v32, %v1265_v1 }
 0x913   :  { %1876 = vrot.lane.b32.xlu1 %v1875_v0, %s1956_s13 }
 0x914   :  { %v1885_v4 = vpack.i.bf16 %v1268_v3, %v1267_v2 }
 0x915   :  { %v1911_v5 = vpop.eup %1910 }
 0x916   :  { %v1049_v6 = vsel %vm623_vm2, %v1911_v5, 0.0  ;;  %v1913_v7 = vpop.eup %1912 }
 0x917   :  { %1050 = vadd.xlane.f32.xlu0 %v1049_v6  ;;  %v1046_v8 = vsel %vm623_vm2, %v1913_v7, 0.0 }
 0x918   :  { %v1915_v9 = vpop.eup %1914 }
 0x919   :  { %v1256_v10 = vsel %vm623_vm2, %v1915_v9, 0.0  ;;  %v1917_v33 = vpop.eup %1916 }
 0x91a   :  { %v1253_v32 = vsel %vm623_vm2, %v1917_v33, 0.0 }
 0x91b   :  { %1047 = vadd.xlane.f32.xlu0 %v1046_v8 }
 0x91f   :  { %1257 = vadd.xlane.f32.xlu0 %v1256_v10 }
 0x935   :  { %1881 = vrot.lane.b32.xlu0 %v1880_v63, %s1956_s13 }
 0x937   :  { %1254 = vadd.xlane.f32.xlu1 %v1253_v32 }
 0x93f   :  { %v638_v14 = vpop.xlane.xlu0 %637 }
 0x940   :  { %1918 = vrcp.f32 %v638_v14 }
 0x942   :  { %v641_v17 = vpop.xlane.xlu1 %640 }
 0x943   :  { %1920 = vrcp.f32 %v641_v17 }
 0x948   :  { %1886 = vrot.lane.b32.xlu1 %v1885_v4, %s1956_s13 }
 0x94a   :  { %v1919_v15 = vpop.eup %1918 }
 0x94b   :  { %v644_v16 = vmul.f32 %v1919_v15, %v1907_v41  ;;  %v1361_v41 = vld [vmem:[%s2295_s2 + $0x8] sm:$0xff]  ;;  %s1461_s2 = sshll.u32 %s1957_s24, 4  ;;  %s1462_s2 = int_to_ptr.vmem [resolvable:$true] %s1461_s2 }
 0x94c   :  { %v1845_v45 = vpack.c.bf16 %v1361_v41, %v1360_v37  ;;  %s1930_s25 = scalar_lea.vmem %s1462_s2, 256  ;;  %p1935_p1 = scmp.lt.s32.totalorder %s1462_s2, %s1462_s2 }
 0x94d   :  { %1699 = vmatprep.mubr.msk.f32.mxu0 %vm623_vm2, %v644_v16  ;;  %v1921_v58 = vpop.eup %1920  ;;  %p1931_p0 = scmp.ne.s32.totalorder %s1462_s2, %s1930_s25  ;;  %p1936_p2 = scmp.lt.s32.totalorder %s1930_s25, %s1930_s25 }
 0x94e   :  { %v645_v24 = vmul.f32 %v1921_v58, %v1909_v42 }
 0x94f   :  { %p1937_p3 = por %p1936_p2, %p1935_p1 }
 0x951   :  { %p1938_p4 = pnand %p1937_p3, %p1931_p0 }
 0x985   :  { %v1877_v18 = vpop.permute.xlu1 %1876 }
 0x986   :  { %v1879_v19 = vunpack.i.h.bf16 %v1877_v18  ;;  %v1878_v22 = vunpack.i.l.bf16 %v1877_v18 }
 0x988   :  { %v1821_v23 = vpack.c.bf16 %v1879_v19, %v1878_v22 }
 0x98a   :  { %1822 = vmatprep.subr.bf16.mxu0 %v1821_v23 }
 0x98b   :  { %1824 = vmatpush3.bf16.msra.mxu0 %v1821_v23 }
 0x98e   :  { %1700 = vmatmul.mubr.msk.f32.vlgmr.msra.gmra.mrb[4].mxu0 %vm623_vm2, %v645_v24 }
 0x9a4   :  { %v1051_v25 = vpop.xlane.xlu0 %1050 }
 0x9a8   :  { %v1048_v26 = vpop.xlane.xlu0 %1047 }
 0x9a9   :  { %1922 = vrcp.f32 %v1048_v26 }
 0x9aa   :  { %1924 = vrcp.f32 %v1051_v25 }
 0x9ac   :  { %v1258_v27 = vpop.xlane.xlu0 %1257 }
 0x9ad   :  { %1926 = vrcp.f32 %v1258_v27 }
 0x9b0   :  { %v1882_v56 = vpop.permute.xlu0 %1881 }
 0x9b1   :  { %v1884_v28 = vunpack.i.h.bf16 %v1882_v56  ;;  %v1883_v29 = vunpack.i.l.bf16 %v1882_v56 }
 0x9b3   :  { %v1923_v30 = vpop.eup %1922  ;;  %v1831_v34 = vpack.c.bf16 %v1884_v28, %v1883_v29 }
 0x9b4   :  { %v1925_v35 = vpop.eup %1924  ;;  %v1054_v36 = vmul.f32 %v1923_v30, %v1913_v7 }
 0x9b5   :  { %1832 = vmatprep.subr.bf16.mxu0 %v1831_v34  ;;  %v1055_v38 = vmul.f32 %v1925_v35, %v1911_v5 }
 0x9b6   :  { %1834 = vmatpush3.bf16.msra.mxu0 %v1831_v34  ;;  %1713 = vmatprep.mubr.msk.f32.mxu0 %vm623_vm2, %v1054_v36 }
 0x9b7   :  { %v1927_v47 = vpop.eup %1926 }
 0x9b8   :  { %v1262_v49 = vmul.f32 %v1927_v47, %v1915_v9 }
 0x9b9   :  { %1714 = vmatmul.mubr.msk.f32.vlgmr.msra.gmra.mrb[4].mxu0 %vm623_vm2, %v1055_v38 }
 0x9c4   :  { %v1255_v39 = vpop.xlane.xlu1 %1254 }
 0x9c5   :  { %1928 = vrcp.f32 %v1255_v39 }
 0x9c8   :  { %v1887_v40 = vpop.permute.xlu1 %1886 }
 0x9c9   :  { %v1889_v42 = vunpack.i.h.bf16 %v1887_v40  ;;  %v1888_v43 = vunpack.i.l.bf16 %v1887_v40 }
 0x9cb   :  { %v1841_v44 = vpack.c.bf16 %v1889_v42, %v1888_v43 }
 0x9cd   :  { %1842 = vmatprep.subr.bf16.mxu0 %v1841_v44 }
 0x9ce   :  { %1844 = vmatpush3.bf16.msra.mxu0 %v1841_v44 }
 0x9cf   :  { %v1929_v57 = vpop.eup %1928  ;;  %1846 = vmatprep.subr.bf16.mxu0 %v1845_v45 }
 0x9d0   :  { %v1261_v48 = vmul.f32 %v1929_v57, %v1917_v33 }
 0x9d2   :  { %1727 = vmatprep.mubr.msk.f32.mxu0 %vm623_vm2, %v1261_v48 }
 0x9d3   :  { %1728 = vmatmul.mubr.msk.f32.vlgmr.msra.gmra.mrb[4].mxu0 %vm623_vm2, %v1262_v49 }
 0x9d4   :  { %1848 = vmatpush3.bf16.msra.mxu0 %v1845_v45 }
 0x9d5   :  { %1850 = vmatprep.subr.bf16.mxu0 %v1849_v51 }
 0x9d8   :  { %1852 = vmatpush3.bf16.msra.mxu0 %v1849_v51 }
 0xaa6   :  { %v1729_v52 = vpop.f32.mrb[4].mxu0 }
 0xaa7   :  { %v1853_v53 = vadd.f32 %v1729_v52, %v2222_v20  ;;  %v1349_v54 = vpop.f32.mrb[5].mxu0 }
 0xaa8   :  { %v1854_v55 = vadd.f32 %v1349_v54, %v2224_v21 }
 0xaaa   :  { %1738 = vmatprep.mubr.msk.f32.mxu0 %vm126_vm0, %v1854_v55 }
 0xaab   :  { %1739 = vmatmul.mubr.msk.f32.vlgmr.msra.gmra.mrb[6].mxu0 %vm126_vm0, %v1853_v53 }
 0xb7e   :  { %v1740_v60 = vpop.f32.mrb[6].mxu0 }
 0xb7f   :  { %v1449_v61 = vadd.f32 %v1740_v60, %v1512_v59  ;;  %v1443_v62 = vpop.f32.mrb[7].mxu0 }
 0xb80   :  { %v1444_v63 = vadd.f32 %v1512_v59, %v1443_v62 }
 0xb81   :  { %v1453_v0 = vadd.f32 %v1449_v61, %v2074_v31 }
 0xb82   :  { %v1452_v20 = vadd.f32 %v1444_v63, %v2027_v11 }
 0xb83   :  { %1455 = vst [vmem:[#allocation2 + $0x8] sm:$0xff] %v1453_v0 }
 0xb84   :  { %1454 = vst [vmem:[#allocation2] sm:$0xff] %v1452_v20 }
 0xb85   :  { %1941 = shalt.err (!%p1938_p4)
}
 0xb86   :  { %s1942_s27 = scalar_lea.hbm %s2300_s7, 256 }
 0xb87   :  { %p1943_p5 = scmp.ne.s32.totalorder %s2300_s7, %s1942_s27  ;;  %p1946_p6 = scmp.lt.u32.totalorder %s1942_s27, %s2300_s7 }
 0xb89   :  { %p1948_p7 = pnand %p1946_p6, %p1943_p5 }
 0xb8b   :  { %1951 = shalt.err (!%p1948_p7)
}
 0xb8c   :  { %s1958_s8 = smov 128   ;;  %s1959_s9 = smov 8  }
 0xb8d   :  { %1467 = dma.vmem_to_hbm [thread:$0]  %s1462_s2, 256, %s2300_s7, [#allocation3], %s1958_s8, %s1958_s8, %s1959_s9  }
 0xb8e   :  { %1952 = dma.done.wait [#allocation3], 256  }
 0xb8f   :  { %1953 = vsyncadd [#allocation3], 4294967040 }
 0xb90   :  { %1471 = vsyncpa [#allocation3], 1 }

</bundles_post_ra>
